<compile_context>
chip_gen: v6e
topology: v6e:2x2x1
jax: 0.10.0
libtpu: 0.0.40
codegen_flags: <defaults>
</compile_context>

<pallas_src>
import functools

import jax
import jax.numpy as jnp
from jax import lax
from jax.experimental import pallas as pl
from jax.experimental.pallas import tpu as pltpu


def rnn_recurrence_kernel(xproj_ref, w_hh_ref, out_ref, h_scratch):
    """One grid step == one chunk of Tc time steps.

    Serial work only:  h_t = tanh(xproj_t + h_{t-1} @ W_hh^T)
    xproj already contains x_t @ W_ih^T + (b_ih + b_hh).
    """
    tc = xproj_ref.shape[0]          # static chunk length

    @pl.when(pl.program_id(0) == 0)
    def _():
        h_scratch[...] = jnp.zeros_like(h_scratch)

    w_hh = w_hh_ref[...]             # (H, H), loaded once per chunk

    def step(t, h):
        h_new = jnp.tanh(
            xproj_ref[t]
            + jnp.dot(h, w_hh, preferred_element_type=jnp.float32))
        out_ref[t] = h_new
        return h_new

    # Unrolled so the LLO scheduler sees all Tc matmuls of the chunk.
    h_scratch[...] = lax.fori_loop(0, tc, step, h_scratch[...], unroll=True)


def rnnet_forward(x_btf, params, time_chunk=None):
    """x_btf: (B, T, F) float32.

    Returns (fc_out of shape (B*T, O), hn of shape (1, B, H)), matching the
    PyTorch module's (self.fc(out.view(-1, H)), hn).
    """
    B, T, F = x_btf.shape
    H = params["w_hh"].shape[0]
    O = params["w_fc"].shape[1]

    tc = T if time_chunk is None else time_chunk
    assert T % tc == 0, "time_chunk must divide T"

    # ---- Hoisted input projection: one big GEMM, off the serial path. ----
    fused_bias = params["b_ih"] + params["b_hh"]                    # (1, H)
    x_tbf = jnp.transpose(x_btf, (1, 0, 2))                         # (T, B, F)
    xproj = (x_tbf.reshape(T * B, F) @ params["w_ih"]
             + fused_bias).reshape(T, B, H)                         # (T, B, H)

    # ---- Pallas: the serial recurrence, time-chunked. ----
    out_tbh = pl.pallas_call(
        rnn_recurrence_kernel,
        grid_spec=pltpu.PrefetchScalarGridSpec(
            num_scalar_prefetch=0,
            grid=(T // tc,),
            in_specs=[
                pl.BlockSpec((tc, B, H), lambda c: (c, 0, 0)),  # xproj chunk
                pl.BlockSpec((H, H), lambda c: (0, 0)),          # W_hh^T
            ],
            out_specs=pl.BlockSpec((tc, B, H), lambda c: (c, 0, 0)),
            scratch_shapes=[pltpu.VMEM((B, H), jnp.float32)],    # h carry
        ),
        out_shape=jax.ShapeDtypeStruct((T, B, H), jnp.float32),
        compiler_params=pltpu.CompilerParams(
            dimension_semantics=("arbitrary",)),  # recurrent carry -> sequential
    )(xproj, params["w_hh"])

    # ---- FC head: one big GEMM, off the serial path. ----
    hn = out_tbh[-1][None, :, :]                                    # (1, B, H)
    out_bth = jnp.transpose(out_tbh, (1, 0, 2))                     # (B, T, H)
    fc_out = out_bth.reshape(B * T, H) @ params["w_fc"] + params["b_fc"]
    return fc_out, hn


def init_params(key, input_dim, hidden_dim, output_dim):
    k_rnn = 1.0 / jnp.sqrt(hidden_dim)
    k_fc = 1.0 / jnp.sqrt(hidden_dim)
    ks = jax.random.split(key, 6)
    # Stored pre-transposed: W_ih^T (F,H), W_hh^T (H,H), W_fc^T (H,O)
    return {
        "w_ih": jax.random.uniform(ks[0], (input_dim, hidden_dim), jnp.float32, -k_rnn, k_rnn),
        "w_hh": jax.random.uniform(ks[1], (hidden_dim, hidden_dim), jnp.float32, -k_rnn, k_rnn),
        "b_ih": jax.random.uniform(ks[2], (1, hidden_dim), jnp.float32, -k_rnn, k_rnn),
        "b_hh": jax.random.uniform(ks[3], (1, hidden_dim), jnp.float32, -k_rnn, k_rnn),
        "w_fc": jax.random.uniform(ks[4], (hidden_dim, output_dim), jnp.float32, -k_fc, k_fc),
        "b_fc": jax.random.uniform(ks[5], (1, output_dim), jnp.float32, -k_fc, k_fc),
    }


def reference_forward(x_btf, params):
    """Pure-JAX reference mirroring torch.nn.RNN(tanh, batch_first) + Linear."""
    B, T, F = x_btf.shape
    H = params["w_hh"].shape[0]
    h = jnp.zeros((B, H), jnp.float32)
    outs = []
    for t in range(T):
        h = jnp.tanh(x_btf[:, t, :] @ params["w_ih"] + params["b_ih"]
                     + h @ params["w_hh"] + params["b_hh"])
        outs.append(h)
    out = jnp.stack(outs, axis=1)                       # (B, T, H)
    fc = out.reshape(B * T, H) @ params["w_fc"] + params["b_fc"]
    return fc, h[None, :, :]


if __name__ == "__main__":
    batch, seq, input_dim, hidden_dim, output_dim = 2, 8, 16, 64, 3

    key = jax.random.PRNGKey(0)
    k_x, k_p = jax.random.split(key)
    x = jax.random.normal(k_x, (batch, seq, input_dim), jnp.float32)
    params = init_params(k_p, input_dim, hidden_dim, output_dim)

    fwd = jax.jit(functools.partial(rnnet_forward, time_chunk=seq))
    fc_out, hn = fwd(x, params)
    jax.block_until_ready((fc_out, hn))

    fc_ref, hn_ref = reference_forward(x, params)
    assert fc_out.shape == (batch * seq, output_dim)
    assert hn.shape == (1, batch, hidden_dim)
    assert jnp.allclose(fc_out, fc_ref, atol=1e-5, rtol=1e-5)
    assert jnp.allclose(hn, hn_ref, atol=1e-5, rtol=1e-5)

    print("KERNEL_OK")
</pallas_src>

<mosaic_0001>
module attributes {stable_mosaic.version = 11 : i64} {
  func.func @rnn_recurrence_kernel(%arg0: i32, %arg1: memref<8x2x64xf32, #tpu.memory_space<vmem>>, %arg2: memref<64x64xf32, #tpu.memory_space<vmem>>, %arg3: memref<8x2x64xf32, #tpu.memory_space<vmem>>, %arg4: memref<2x64xf32, #tpu.memory_space<vmem>>) attributes {dimension_semantics = [#tpu.dimension_semantics<arbitrary>], iteration_bounds = array<i64: 1>, scalar_prefetch = 0 : i64, scratch_operands = 1 : i64, tpu.core_type = #tpu.core_type<tc>, window_params = [{transform_indices = @transform_0, window_bounds = array<i64: 8, 2, 64>}, {pipeline_mode = #tpu.pipeline_mode<synchronous>, transform_indices = @transform_1, window_bounds = array<i64: 64, 64>}, {transform_indices = @transform_2, window_bounds = array<i64: 8, 2, 64>}]} {
    %c0_i32 = arith.constant 0 : i32
    %0 = arith.cmpi eq, %arg0, %c0_i32 : i32
    %1 = arith.extui %0 : i1 to i32
    %c0_i32_0 = arith.constant 0 : i32
    %2 = arith.cmpi ne, %1, %c0_i32_0 : i32
    scf.if %2 {
      %cst_46 = arith.constant 0.000000e+00 : f32
      %86 = vector.broadcast %cst_46 : f32 to vector<2x64xf32>
      %c0_47 = arith.constant 0 : index
      %c0_48 = arith.constant 0 : index
      %87 = vector.load %arg4[%c0_47, %c0_48] : memref<2x64xf32, #tpu.memory_space<vmem>>, vector<2x64xf32>
      tpu.vector_store %arg4[%c0_47, %c0_48], %86 {strides = array<i32>} : memref<2x64xf32, #tpu.memory_space<vmem>>, vector<2x64xf32>,
    } else {
    }
    %c0 = arith.constant 0 : index
    %c0_1 = arith.constant 0 : index
    %3 = vector.load %arg2[%c0, %c0_1] : memref<64x64xf32, #tpu.memory_space<vmem>>, vector<64x64xf32>
    %c0_2 = arith.constant 0 : index
    %c0_3 = arith.constant 0 : index
    %4 = vector.load %arg4[%c0_2, %c0_3] : memref<2x64xf32, #tpu.memory_space<vmem>>, vector<2x64xf32>
    %c0_i32_4 = arith.constant 0 : i32
    %5 = arith.index_cast %c0_i32_4 : i32 to index
    %c0_5 = arith.constant 0 : index
    %c0_6 = arith.constant 0 : index
    %6 = vector.load %arg1[%5, %c0_5, %c0_6] : memref<8x2x64xf32, #tpu.memory_space<vmem>>, vector<1x2x64xf32>
    %7 = vector.shape_cast %6 : vector<1x2x64xf32> to vector<2x64xf32>
    %cst = arith.constant dense<0.000000e+00> : vector<2x64xf32>
    %8 = tpu.matmul %4, %3, %cst {dimension_numbers = #tpu.dot_dimension_numbers<[1], [0], [0], [1], [0, 0, 1, 1], [], []>} : vector<2x64xf32>, vector<64x64xf32>, vector<2x64xf32> -> vector<2x64xf32>
    %9 = arith.addf %7, %8 : vector<2x64xf32>
    %10 = math.tanh %9 : vector<2x64xf32>
    %11 = arith.index_cast %c0_i32_4 : i32 to index
    %c0_7 = arith.constant 0 : index
    %c0_8 = arith.constant 0 : index
    %12 = vector.load %arg3[%11, %c0_7, %c0_8] : memref<8x2x64xf32, #tpu.memory_space<vmem>>, vector<1x2x64xf32>
    %13 = vector.shape_cast %12 : vector<1x2x64xf32> to vector<2x64xf32>
    %14 = vector.shape_cast %10 : vector<2x64xf32> to vector<1x2x64xf32>
    tpu.vector_store %arg3[%11, %c0_7, %c0_8], %14 {strides = array<i32>} : memref<8x2x64xf32, #tpu.memory_space<vmem>>, vector<1x2x64xf32>,
    %c1_i32 = arith.constant 1 : i32
    %15 = arith.index_cast %c1_i32 : i32 to index
    %c0_9 = arith.constant 0 : index
    %c0_10 = arith.constant 0 : index
    %16 = vector.load %arg1[%15, %c0_9, %c0_10] : memref<8x2x64xf32, #tpu.memory_space<vmem>>, vector<1x2x64xf32>
    %17 = vector.shape_cast %16 : vector<1x2x64xf32> to vector<2x64xf32>
    %cst_11 = arith.constant dense<0.000000e+00> : vector<2x64xf32>
    %18 = tpu.matmul %10, %3, %cst_11 {dimension_numbers = #tpu.dot_dimension_numbers<[1], [0], [0], [1], [0, 0, 1, 1], [], []>} : vector<2x64xf32>, vector<64x64xf32>, vector<2x64xf32> -> vector<2x64xf32>
    %19 = arith.addf %17, %18 : vector<2x64xf32>
    %20 = math.tanh %19 : vector<2x64xf32>
    %21 = arith.index_cast %c1_i32 : i32 to index
    %c0_12 = arith.constant 0 : index
    %c0_13 = arith.constant 0 : index
    %22 = vector.load %arg3[%21, %c0_12, %c0_13] : memref<8x2x64xf32, #tpu.memory_space<vmem>>, vector<1x2x64xf32>
    %23 = vector.shape_cast %22 : vector<1x2x64xf32> to vector<2x64xf32>
    %24 = vector.shape_cast %20 : vector<2x64xf32> to vector<1x2x64xf32>
    tpu.vector_store %arg3[%21, %c0_12, %c0_13], %24 {strides = array<i32>} : memref<8x2x64xf32, #tpu.memory_space<vmem>>, vector<1x2x64xf32>,
    %c2_i32 = arith.constant 2 : i32
    %25 = arith.index_cast %c2_i32 : i32 to index
    %c0_14 = arith.constant 0 : index
    %c0_15 = arith.constant 0 : index
    %26 = vector.load %arg1[%25, %c0_14, %c0_15] : memref<8x2x64xf32, #tpu.memory_space<vmem>>, vector<1x2x64xf32>
    %27 = vector.shape_cast %26 : vector<1x2x64xf32> to vector<2x64xf32>
    %cst_16 = arith.constant dense<0.000000e+00> : vector<2x64xf32>
    %28 = tpu.matmul %20, %3, %cst_16 {dimension_numbers = #tpu.dot_dimension_numbers<[1], [0], [0], [1], [0, 0, 1, 1], [], []>} : vector<2x64xf32>, vector<64x64xf32>, vector<2x64xf32> -> vector<2x64xf32>
    %29 = arith.addf %27, %28 : vector<2x64xf32>
    %30 = math.tanh %29 : vector<2x64xf32>
    %31 = arith.index_cast %c2_i32 : i32 to index
    %c0_17 = arith.constant 0 : index
    %c0_18 = arith.constant 0 : index
    %32 = vector.load %arg3[%31, %c0_17, %c0_18] : memref<8x2x64xf32, #tpu.memory_space<vmem>>, vector<1x2x64xf32>
    %33 = vector.shape_cast %32 : vector<1x2x64xf32> to vector<2x64xf32>
    %34 = vector.shape_cast %30 : vector<2x64xf32> to vector<1x2x64xf32>
    tpu.vector_store %arg3[%31, %c0_17, %c0_18], %34 {strides = array<i32>} : memref<8x2x64xf32, #tpu.memory_space<vmem>>, vector<1x2x64xf32>,
    %c3_i32 = arith.constant 3 : i32
    %35 = arith.index_cast %c3_i32 : i32 to index
    %c0_19 = arith.constant 0 : index
    %c0_20 = arith.constant 0 : index
    %36 = vector.load %arg1[%35, %c0_19, %c0_20] : memref<8x2x64xf32, #tpu.memory_space<vmem>>, vector<1x2x64xf32>
    %37 = vector.shape_cast %36 : vector<1x2x64xf32> to vector<2x64xf32>
    %cst_21 = arith.constant dense<0.000000e+00> : vector<2x64xf32>
    %38 = tpu.matmul %30, %3, %cst_21 {dimension_numbers = #tpu.dot_dimension_numbers<[1], [0], [0], [1], [0, 0, 1, 1], [], []>} : vector<2x64xf32>, vector<64x64xf32>, vector<2x64xf32> -> vector<2x64xf32>
    %39 = arith.addf %37, %38 : vector<2x64xf32>
    %40 = math.tanh %39 : vector<2x64xf32>
    %41 = arith.index_cast %c3_i32 : i32 to index
    %c0_22 = arith.constant 0 : index
    %c0_23 = arith.constant 0 : index
    %42 = vector.load %arg3[%41, %c0_22, %c0_23] : memref<8x2x64xf32, #tpu.memory_space<vmem>>, vector<1x2x64xf32>
    %43 = vector.shape_cast %42 : vector<1x2x64xf32> to vector<2x64xf32>
    %44 = vector.shape_cast %40 : vector<2x64xf32> to vector<1x2x64xf32>
    tpu.vector_store %arg3[%41, %c0_22, %c0_23], %44 {strides = array<i32>} : memref<8x2x64xf32, #tpu.memory_space<vmem>>, vector<1x2x64xf32>,
    %c4_i32 = arith.constant 4 : i32
    %45 = arith.index_cast %c4_i32 : i32 to index
    %c0_24 = arith.constant 0 : index
    %c0_25 = arith.constant 0 : index
    %46 = vector.load %arg1[%45, %c0_24, %c0_25] : memref<8x2x64xf32, #tpu.memory_space<vmem>>, vector<1x2x64xf32>
    %47 = vector.shape_cast %46 : vector<1x2x64xf32> to vector<2x64xf32>
    %cst_26 = arith.constant dense<0.000000e+00> : vector<2x64xf32>
    %48 = tpu.matmul %40, %3, %cst_26 {dimension_numbers = #tpu.dot_dimension_numbers<[1], [0], [0], [1], [0, 0, 1, 1], [], []>} : vector<2x64xf32>, vector<64x64xf32>, vector<2x64xf32> -> vector<2x64xf32>
    %49 = arith.addf %47, %48 : vector<2x64xf32>
    %50 = math.tanh %49 : vector<2x64xf32>
    %51 = arith.index_cast %c4_i32 : i32 to index
    %c0_27 = arith.constant 0 : index
    %c0_28 = arith.constant 0 : index
    %52 = vector.load %arg3[%51, %c0_27, %c0_28] : memref<8x2x64xf32, #tpu.memory_space<vmem>>, vector<1x2x64xf32>
    %53 = vector.shape_cast %52 : vector<1x2x64xf32> to vector<2x64xf32>
    %54 = vector.shape_cast %50 : vector<2x64xf32> to vector<1x2x64xf32>
    tpu.vector_store %arg3[%51, %c0_27, %c0_28], %54 {strides = array<i32>} : memref<8x2x64xf32, #tpu.memory_space<vmem>>, vector<1x2x64xf32>,
    %c5_i32 = arith.constant 5 : i32
    %55 = arith.index_cast %c5_i32 : i32 to index
    %c0_29 = arith.constant 0 : index
    %c0_30 = arith.constant 0 : index
    %56 = vector.load %arg1[%55, %c0_29, %c0_30] : memref<8x2x64xf32, #tpu.memory_space<vmem>>, vector<1x2x64xf32>
    %57 = vector.shape_cast %56 : vector<1x2x64xf32> to vector<2x64xf32>
    %cst_31 = arith.constant dense<0.000000e+00> : vector<2x64xf32>
    %58 = tpu.matmul %50, %3, %cst_31 {dimension_numbers = #tpu.dot_dimension_numbers<[1], [0], [0], [1], [0, 0, 1, 1], [], []>} : vector<2x64xf32>, vector<64x64xf32>, vector<2x64xf32> -> vector<2x64xf32>
    %59 = arith.addf %57, %58 : vector<2x64xf32>
    %60 = math.tanh %59 : vector<2x64xf32>
    %61 = arith.index_cast %c5_i32 : i32 to index
    %c0_32 = arith.constant 0 : index
    %c0_33 = arith.constant 0 : index
    %62 = vector.load %arg3[%61, %c0_32, %c0_33] : memref<8x2x64xf32, #tpu.memory_space<vmem>>, vector<1x2x64xf32>
    %63 = vector.shape_cast %62 : vector<1x2x64xf32> to vector<2x64xf32>
    %64 = vector.shape_cast %60 : vector<2x64xf32> to vector<1x2x64xf32>
    tpu.vector_store %arg3[%61, %c0_32, %c0_33], %64 {strides = array<i32>} : memref<8x2x64xf32, #tpu.memory_space<vmem>>, vector<1x2x64xf32>,
    %c6_i32 = arith.constant 6 : i32
    %65 = arith.index_cast %c6_i32 : i32 to index
    %c0_34 = arith.constant 0 : index
    %c0_35 = arith.constant 0 : index
    %66 = vector.load %arg1[%65, %c0_34, %c0_35] : memref<8x2x64xf32, #tpu.memory_space<vmem>>, vector<1x2x64xf32>
    %67 = vector.shape_cast %66 : vector<1x2x64xf32> to vector<2x64xf32>
    %cst_36 = arith.constant dense<0.000000e+00> : vector<2x64xf32>
    %68 = tpu.matmul %60, %3, %cst_36 {dimension_numbers = #tpu.dot_dimension_numbers<[1], [0], [0], [1], [0, 0, 1, 1], [], []>} : vector<2x64xf32>, vector<64x64xf32>, vector<2x64xf32> -> vector<2x64xf32>
    %69 = arith.addf %67, %68 : vector<2x64xf32>
    %70 = math.tanh %69 : vector<2x64xf32>
    %71 = arith.index_cast %c6_i32 : i32 to index
    %c0_37 = arith.constant 0 : index
    %c0_38 = arith.constant 0 : index
    %72 = vector.load %arg3[%71, %c0_37, %c0_38] : memref<8x2x64xf32, #tpu.memory_space<vmem>>, vector<1x2x64xf32>
    %73 = vector.shape_cast %72 : vector<1x2x64xf32> to vector<2x64xf32>
    %74 = vector.shape_cast %70 : vector<2x64xf32> to vector<1x2x64xf32>
    tpu.vector_store %arg3[%71, %c0_37, %c0_38], %74 {strides = array<i32>} : memref<8x2x64xf32, #tpu.memory_space<vmem>>, vector<1x2x64xf32>,
    %c7_i32 = arith.constant 7 : i32
    %75 = arith.index_cast %c7_i32 : i32 to index
    %c0_39 = arith.constant 0 : index
    %c0_40 = arith.constant 0 : index
    %76 = vector.load %arg1[%75, %c0_39, %c0_40] : memref<8x2x64xf32, #tpu.memory_space<vmem>>, vector<1x2x64xf32>
    %77 = vector.shape_cast %76 : vector<1x2x64xf32> to vector<2x64xf32>
    %cst_41 = arith.constant dense<0.000000e+00> : vector<2x64xf32>
    %78 = tpu.matmul %70, %3, %cst_41 {dimension_numbers = #tpu.dot_dimension_numbers<[1], [0], [0], [1], [0, 0, 1, 1], [], []>} : vector<2x64xf32>, vector<64x64xf32>, vector<2x64xf32> -> vector<2x64xf32>
    %79 = arith.addf %77, %78 : vector<2x64xf32>
    %80 = math.tanh %79 : vector<2x64xf32>
    %81 = arith.index_cast %c7_i32 : i32 to index
    %c0_42 = arith.constant 0 : index
    %c0_43 = arith.constant 0 : index
    %82 = vector.load %arg3[%81, %c0_42, %c0_43] : memref<8x2x64xf32, #tpu.memory_space<vmem>>, vector<1x2x64xf32>
    %83 = vector.shape_cast %82 : vector<1x2x64xf32> to vector<2x64xf32>
    %84 = vector.shape_cast %80 : vector<2x64xf32> to vector<1x2x64xf32>
    tpu.vector_store %arg3[%81, %c0_42, %c0_43], %84 {strides = array<i32>} : memref<8x2x64xf32, #tpu.memory_space<vmem>>, vector<1x2x64xf32>,
    %c8_i32 = arith.constant 8 : i32
    %c0_44 = arith.constant 0 : index
    %c0_45 = arith.constant 0 : index
    %85 = vector.load %arg4[%c0_44, %c0_45] : memref<2x64xf32, #tpu.memory_space<vmem>>, vector<2x64xf32>
    tpu.vector_store %arg4[%c0_44, %c0_45], %80 {strides = array<i32>} : memref<2x64xf32, #tpu.memory_space<vmem>>, vector<2x64xf32>,
    return
  }
  func.func @transform_0(%arg0: i32) -> (i32, i32, i32) {
    %c0_i32 = arith.constant 0 : i32
    %c0_i32_0 = arith.constant 0 : i32
    %c0_i32_1 = arith.constant 0 : i32
    return %arg0, %c0_i32, %c0_i32_0 : i32, i32, i32
  }
  func.func @transform_1(%arg0: i32) -> (i32, i32) {
    %c0_i32 = arith.constant 0 : i32
    %c0_i32_0 = arith.constant 0 : i32
    %c0_i32_1 = arith.constant 0 : i32
    return %c0_i32, %c0_i32_0 : i32, i32
  }
  func.func @transform_2(%arg0: i32) -> (i32, i32, i32) {
    %c0_i32 = arith.constant 0 : i32
    %c0_i32_0 = arith.constant 0 : i32
    %c0_i32_1 = arith.constant 0 : i32
    return %arg0, %c0_i32, %c0_i32_0 : i32, i32, i32
  }
}

</mosaic_0001>

<bundles_post_ra>
// kernel: rnnet_forward.1
= control target key start
LH: loop header
LB: loop body
LE: loop exit
PB: predicated region body
PF: predicated region fallthrough
CT: control target
= control target key end

     0   :  { %vm15_vm0 = vcmask 517120   ;;  %v927_v0 = vmov 0.0   ;;  %vm928_vm1 = vmmov 0   ;;  %vm27_vm2 = vcmask 523264   ;;  %s1195_s1 = inlined_call_operand.vmem [shape: f32[64,64], index: 1, kind: input, shape index: {}]   ;;  %s1196_s0 = inlined_call_operand.vmem [shape: f32[8,2,64], index: 0, kind: input, shape index: {}]   ;;  %s1197_s2 = inlined_call_operand.vmem [shape: f32[8,2,64], index: 2, kind: output, shape index: {}]  }
   0x1   :  { %757 = vmatprep.subr.mxu0 %v927_v0  ;;  %v948_v1 = vld [vmem:[%s1195_s1 + $0x38] sm:$0xff]  ;;  %v953_v2 = vld [vmem:[%s1195_s1 + $0x30] sm:$0xff]  ;;  %773 = vmatprep.mubr.msk.f32.mxu0 %vm928_vm1, %v927_v0  ;;  %16 = vst.msk [vmem:[#allocation2] sm:$0x3] %vm15_vm0, %v927_v0  ;;  %v965_v3 = vld [vmem:[%s1195_s1 + $0x28] sm:$0xff] }
   0x2   :  { %758 = vmatpush3.msra.mxu0 %v948_v1  ;;  %776 = vmatprep.subr.mxu1 %v927_v0  ;;  %v974_v4 = vld [vmem:[%s1195_s1 + $0x20] sm:$0xff]  ;;  %v983_v5 = vld [vmem:[%s1195_s1 + $0x18] sm:$0xff]  ;;  %v992_v6 = vld [vmem:[%s1195_s1 + $0x10] sm:$0xff] }
   0x3   :  { %759 = vmatprep.subr.mxu0 %v927_v0  ;;  %777 = vmatpush3.msra.mxu1 %v948_v1  ;;  %v1001_v7 = vld [vmem:[%s1195_s1 + $0x8] sm:$0xff]  ;;  %v1010_v8 = vld [vmem:[%s1195_s1] sm:$0xff] }
   0x4   :  { %760 = vmatpush3.msra.mxu0 %v953_v2  ;;  %778 = vmatprep.subr.mxu1 %v927_v0  ;;  %v26_v10 = vld [vmem:[%s1196_s0] sm:$0x3]  ;;  %v664_v15 = vld [vmem:[%s1196_s0 + $0x2] sm:$0x3]  ;;  %v667_v20 = vld [vmem:[%s1196_s0 + $0x4] sm:$0x3] }
   0x5   :  { %761 = vmatprep.subr.mxu0 %v927_v0  ;;  %779 = vmatpush3.msra.mxu1 %v953_v2  ;;  %v670_v25 = vld [vmem:[%s1196_s0 + $0x6] sm:$0x3]  ;;  %v673_v30 = vld [vmem:[%s1196_s0 + $0x8] sm:$0x3]  ;;  %v676_v35 = vld [vmem:[%s1196_s0 + $0xa] sm:$0x3] }
   0x6   :  { %762 = vmatpush3.msra.mxu0 %v965_v3  ;;  %780 = vmatprep.subr.mxu1 %v927_v0  ;;  %v679_v40 = vld [vmem:[%s1196_s0 + $0xc] sm:$0x3]  ;;  %v682_v45 = vld [vmem:[%s1196_s0 + $0xe] sm:$0x3] }
   0x7   :  { %763 = vmatprep.subr.mxu0 %v927_v0  ;;  %781 = vmatpush3.msra.mxu1 %v965_v3 }
   0x8   :  { %764 = vmatpush3.msra.mxu0 %v974_v4  ;;  %782 = vmatprep.subr.mxu1 %v927_v0  ;;  %v25_v9 = vld [vmem:[#allocation2] sm:$0x3] }
   0x9   :  { %765 = vmatprep.subr.mxu0 %v927_v0  ;;  %783 = vmatpush3.msra.mxu1 %v974_v4 }
   0xa   :  { %766 = vmatpush3.msra.mxu0 %v983_v5  ;;  %784 = vmatprep.subr.mxu1 %v927_v0 }
   0xb   :  { %767 = vmatprep.subr.mxu0 %v927_v0  ;;  %785 = vmatpush3.msra.mxu1 %v983_v5 }
   0xc   :  { %768 = vmatpush3.msra.mxu0 %v992_v6  ;;  %786 = vmatprep.subr.mxu1 %v927_v0 }
   0xd   :  { %769 = vmatprep.subr.mxu0 %v927_v0  ;;  %787 = vmatpush3.msra.mxu1 %v992_v6 }
   0xe   :  { %770 = vmatpush3.msra.mxu0 %v1001_v7  ;;  %788 = vmatprep.subr.mxu1 %v927_v0 }
   0xf   :  { %771 = vmatprep.subr.mxu0 %v927_v0  ;;  %789 = vmatpush3.msra.mxu1 %v1001_v7 }
  0x10   :  { %772 = vmatpush3.msra.mxu0 %v1010_v8  ;;  %790 = vmatprep.subr.mxu1 %v927_v0 }
  0x11   :  { %774 = vmatmul.mubr.msk.f32.vlgmr.msra.gmra.mxu0 %vm27_vm2, %v25_v9  ;;  %791 = vmatpush3.msra.mxu1 %v1010_v8 }
  0x12   :  { %792 = vmatprep.mubr.msk.f32.mxu1 %vm928_vm1, %v927_v0  ;;  %795 = vmatprep.subr.mxu0 %v927_v0 }
  0x13   :  { %796 = vmatpush3.msra.mxu0 %v948_v1  ;;  %811 = vmatprep.mubr.msk.f32.mxu0 %vm928_vm1, %v927_v0 }
  0x14   :  { %797 = vmatprep.subr.mxu0 %v927_v0  ;;  %814 = vmatprep.subr.mxu1 %v927_v0 }
  0x15   :  { %798 = vmatpush3.msra.mxu0 %v953_v2 }
  0x16   :  { %799 = vmatprep.subr.mxu0 %v927_v0 }
  0x17   :  { %800 = vmatpush3.msra.mxu0 %v965_v3 }
  0x18   :  { %801 = vmatprep.subr.mxu0 %v927_v0 }
  0x19   :  { %802 = vmatpush3.msra.mxu0 %v974_v4 }
  0x1a   :  { %803 = vmatprep.subr.mxu0 %v927_v0 }
  0x1b   :  { %804 = vmatpush3.msra.mxu0 %v983_v5 }
  0x1c   :  { %805 = vmatprep.subr.mxu0 %v927_v0 }
  0x1d   :  { %806 = vmatpush3.msra.mxu0 %v992_v6 }
  0x1e   :  { %807 = vmatprep.subr.mxu0 %v927_v0 }
  0x1f   :  { %808 = vmatpush3.msra.mxu0 %v1001_v7 }
  0x20   :  { %809 = vmatprep.subr.mxu0 %v927_v0 }
  0x21   :  { %810 = vmatpush3.msra.mxu0 %v1010_v8 }
  0x22   :  { %833 = vmatprep.subr.mxu0 %v927_v0 }
  0xd1   :  { %v97_v11 = vpop.f32.mrf.mxu0 }
  0xd2   :  { %v101_v12 = vadd.f32 %v97_v11, %v26_v10 }
  0xd3   :  { %v775_v13 = vpop.f32.mrf.mxu0 }
  0xd4   :  { %911 = vtanh.f32 %v101_v12 }
  0xe1   :  { %v912_v14 = vpop.eup %911 }
  0xe2   :  { %104 = vst.msk [vmem:[%s1197_s2] sm:$0x3] %vm15_vm0, %v912_v14  ;;  %793 = vmatmul.mubr.msk.f32.vlgmr.msra.gmra.mxu1 %vm27_vm2, %v912_v14 }
  0xe3   :  { %815 = vmatpush3.msra.mxu1 %v948_v1  ;;  %830 = vmatprep.mubr.msk.f32.mxu1 %vm928_vm1, %v927_v0 }
  0xe4   :  { %816 = vmatprep.subr.mxu1 %v927_v0 }
  0xe5   :  { %817 = vmatpush3.msra.mxu1 %v953_v2 }
  0xe6   :  { %818 = vmatprep.subr.mxu1 %v927_v0 }
  0xe7   :  { %819 = vmatpush3.msra.mxu1 %v965_v3 }
  0xe8   :  { %820 = vmatprep.subr.mxu1 %v927_v0 }
  0xe9   :  { %821 = vmatpush3.msra.mxu1 %v974_v4 }
  0xea   :  { %822 = vmatprep.subr.mxu1 %v927_v0 }
  0xeb   :  { %823 = vmatpush3.msra.mxu1 %v983_v5 }
  0xec   :  { %824 = vmatprep.subr.mxu1 %v927_v0 }
  0xed   :  { %825 = vmatpush3.msra.mxu1 %v992_v6 }
  0xee   :  { %826 = vmatprep.subr.mxu1 %v927_v0 }
  0xef   :  { %827 = vmatpush3.msra.mxu1 %v1001_v7 }
  0xf0   :  { %828 = vmatprep.subr.mxu1 %v927_v0 }
  0xf1   :  { %829 = vmatpush3.msra.mxu1 %v1010_v8 }
  0xf2   :  { %852 = vmatprep.subr.mxu1 %v927_v0 }
 0x1a2   :  { %v176_v16 = vpop.f32.mrf.mxu1 }
 0x1a3   :  { %v180_v17 = vadd.f32 %v664_v15, %v176_v16 }
 0x1a4   :  { %v794_v18 = vpop.f32.mrf.mxu1 }
 0x1a5   :  { %913 = vtanh.f32 %v180_v17 }
 0x1b2   :  { %v914_v19 = vpop.eup %913 }
 0x1b3   :  { %666 = vst.msk [vmem:[%s1197_s2 + $0x2] sm:$0x3] %vm15_vm0, %v914_v19  ;;  %812 = vmatmul.mubr.msk.f32.vlgmr.msra.gmra.mxu0 %vm27_vm2, %v914_v19 }
 0x1b4   :  { %834 = vmatpush3.msra.mxu0 %v948_v1  ;;  %849 = vmatprep.mubr.msk.f32.mxu0 %vm928_vm1, %v927_v0 }
 0x1b5   :  { %835 = vmatprep.subr.mxu0 %v927_v0 }
 0x1b6   :  { %836 = vmatpush3.msra.mxu0 %v953_v2 }
 0x1b7   :  { %837 = vmatprep.subr.mxu0 %v927_v0 }
 0x1b8   :  { %838 = vmatpush3.msra.mxu0 %v965_v3 }
 0x1b9   :  { %839 = vmatprep.subr.mxu0 %v927_v0 }
 0x1ba   :  { %840 = vmatpush3.msra.mxu0 %v974_v4 }
 0x1bb   :  { %841 = vmatprep.subr.mxu0 %v927_v0 }
 0x1bc   :  { %842 = vmatpush3.msra.mxu0 %v983_v5 }
 0x1bd   :  { %843 = vmatprep.subr.mxu0 %v927_v0 }
 0x1be   :  { %844 = vmatpush3.msra.mxu0 %v992_v6 }
 0x1bf   :  { %845 = vmatprep.subr.mxu0 %v927_v0 }
 0x1c0   :  { %846 = vmatpush3.msra.mxu0 %v1001_v7 }
 0x1c1   :  { %847 = vmatprep.subr.mxu0 %v927_v0 }
 0x1c2   :  { %848 = vmatpush3.msra.mxu0 %v1010_v8 }
 0x1c3   :  { %871 = vmatprep.subr.mxu0 %v927_v0 }
 0x273   :  { %v255_v21 = vpop.f32.mrf.mxu0 }
 0x274   :  { %v259_v22 = vadd.f32 %v667_v20, %v255_v21 }
 0x275   :  { %v813_v23 = vpop.f32.mrf.mxu0 }
 0x276   :  { %915 = vtanh.f32 %v259_v22 }
 0x283   :  { %v916_v24 = vpop.eup %915 }
 0x284   :  { %669 = vst.msk [vmem:[%s1197_s2 + $0x4] sm:$0x3] %vm15_vm0, %v916_v24  ;;  %831 = vmatmul.mubr.msk.f32.vlgmr.msra.gmra.mxu1 %vm27_vm2, %v916_v24 }
 0x285   :  { %853 = vmatpush3.msra.mxu1 %v948_v1  ;;  %868 = vmatprep.mubr.msk.f32.mxu1 %vm928_vm1, %v927_v0 }
 0x286   :  { %854 = vmatprep.subr.mxu1 %v927_v0 }
 0x287   :  { %855 = vmatpush3.msra.mxu1 %v953_v2 }
 0x288   :  { %856 = vmatprep.subr.mxu1 %v927_v0 }
 0x289   :  { %857 = vmatpush3.msra.mxu1 %v965_v3 }
 0x28a   :  { %858 = vmatprep.subr.mxu1 %v927_v0 }
 0x28b   :  { %859 = vmatpush3.msra.mxu1 %v974_v4 }
 0x28c   :  { %860 = vmatprep.subr.mxu1 %v927_v0 }
 0x28d   :  { %861 = vmatpush3.msra.mxu1 %v983_v5 }
 0x28e   :  { %862 = vmatprep.subr.mxu1 %v927_v0 }
 0x28f   :  { %863 = vmatpush3.msra.mxu1 %v992_v6 }
 0x290   :  { %864 = vmatprep.subr.mxu1 %v927_v0 }
 0x291   :  { %865 = vmatpush3.msra.mxu1 %v1001_v7 }
 0x292   :  { %866 = vmatprep.subr.mxu1 %v927_v0 }
 0x293   :  { %867 = vmatpush3.msra.mxu1 %v1010_v8 }
 0x294   :  { %890 = vmatprep.subr.mxu1 %v927_v0 }
 0x344   :  { %v334_v26 = vpop.f32.mrf.mxu1 }
 0x345   :  { %v338_v27 = vadd.f32 %v670_v25, %v334_v26 }
 0x346   :  { %v832_v28 = vpop.f32.mrf.mxu1 }
 0x347   :  { %917 = vtanh.f32 %v338_v27 }
 0x354   :  { %v918_v29 = vpop.eup %917 }
 0x355   :  { %672 = vst.msk [vmem:[%s1197_s2 + $0x6] sm:$0x3] %vm15_vm0, %v918_v29  ;;  %850 = vmatmul.mubr.msk.f32.vlgmr.msra.gmra.mxu0 %vm27_vm2, %v918_v29 }
 0x356   :  { %872 = vmatpush3.msra.mxu0 %v948_v1  ;;  %887 = vmatprep.mubr.msk.f32.mxu0 %vm928_vm1, %v927_v0 }
 0x357   :  { %873 = vmatprep.subr.mxu0 %v927_v0 }
 0x358   :  { %874 = vmatpush3.msra.mxu0 %v953_v2 }
 0x359   :  { %875 = vmatprep.subr.mxu0 %v927_v0 }
 0x35a   :  { %876 = vmatpush3.msra.mxu0 %v965_v3 }
 0x35b   :  { %877 = vmatprep.subr.mxu0 %v927_v0 }
 0x35c   :  { %878 = vmatpush3.msra.mxu0 %v974_v4 }
 0x35d   :  { %879 = vmatprep.subr.mxu0 %v927_v0 }
 0x35e   :  { %880 = vmatpush3.msra.mxu0 %v983_v5 }
 0x35f   :  { %881 = vmatprep.subr.mxu0 %v927_v0 }
 0x360   :  { %882 = vmatpush3.msra.mxu0 %v992_v6 }
 0x361   :  { %883 = vmatprep.subr.mxu0 %v927_v0 }
 0x362   :  { %884 = vmatpush3.msra.mxu0 %v1001_v7 }
 0x363   :  { %885 = vmatprep.subr.mxu0 %v927_v0 }
 0x364   :  { %886 = vmatpush3.msra.mxu0 %v1010_v8 }
 0x415   :  { %v413_v31 = vpop.f32.mrf.mxu0 }
 0x416   :  { %v417_v32 = vadd.f32 %v673_v30, %v413_v31 }
 0x417   :  { %v851_v33 = vpop.f32.mrf.mxu0 }
 0x418   :  { %919 = vtanh.f32 %v417_v32 }
 0x425   :  { %v920_v34 = vpop.eup %919 }
 0x426   :  { %675 = vst.msk [vmem:[%s1197_s2 + $0x8] sm:$0x3] %vm15_vm0, %v920_v34  ;;  %869 = vmatmul.mubr.msk.f32.vlgmr.msra.gmra.mxu1 %vm27_vm2, %v920_v34 }
 0x427   :  { %891 = vmatpush3.msra.mxu1 %v948_v1  ;;  %906 = vmatprep.mubr.msk.f32.mxu1 %vm928_vm1, %v927_v0 }
 0x428   :  { %892 = vmatprep.subr.mxu1 %v927_v0 }
 0x429   :  { %893 = vmatpush3.msra.mxu1 %v953_v2 }
 0x42a   :  { %894 = vmatprep.subr.mxu1 %v927_v0 }
 0x42b   :  { %895 = vmatpush3.msra.mxu1 %v965_v3 }
 0x42c   :  { %896 = vmatprep.subr.mxu1 %v927_v0 }
 0x42d   :  { %897 = vmatpush3.msra.mxu1 %v974_v4 }
 0x42e   :  { %898 = vmatprep.subr.mxu1 %v927_v0 }
 0x42f   :  { %899 = vmatpush3.msra.mxu1 %v983_v5 }
 0x430   :  { %900 = vmatprep.subr.mxu1 %v927_v0 }
 0x431   :  { %901 = vmatpush3.msra.mxu1 %v992_v6 }
 0x432   :  { %902 = vmatprep.subr.mxu1 %v927_v0 }
 0x433   :  { %903 = vmatpush3.msra.mxu1 %v1001_v7 }
 0x434   :  { %904 = vmatprep.subr.mxu1 %v927_v0 }
 0x435   :  { %905 = vmatpush3.msra.mxu1 %v1010_v8 }
 0x4e6   :  { %v492_v36 = vpop.f32.mrf.mxu1 }
 0x4e7   :  { %v496_v37 = vadd.f32 %v676_v35, %v492_v36 }
 0x4e8   :  { %v870_v38 = vpop.f32.mrf.mxu1 }
 0x4e9   :  { %921 = vtanh.f32 %v496_v37 }
 0x4f6   :  { %v922_v39 = vpop.eup %921 }
 0x4f7   :  { %678 = vst.msk [vmem:[%s1197_s2 + $0xa] sm:$0x3] %vm15_vm0, %v922_v39  ;;  %888 = vmatmul.mubr.msk.f32.vlgmr.msra.gmra.mxu0 %vm27_vm2, %v922_v39 }
 0x5b7   :  { %v571_v41 = vpop.f32.mrf.mxu0 }
 0x5b8   :  { %v575_v42 = vadd.f32 %v679_v40, %v571_v41 }
 0x5b9   :  { %v889_v43 = vpop.f32.mrf.mxu0 }
 0x5ba   :  { %923 = vtanh.f32 %v575_v42 }
 0x5c7   :  { %v924_v44 = vpop.eup %923 }
 0x5c8   :  { %681 = vst.msk [vmem:[%s1197_s2 + $0xc] sm:$0x3] %vm15_vm0, %v924_v44  ;;  %907 = vmatmul.mubr.msk.f32.vlgmr.msra.gmra.mxu1 %vm27_vm2, %v924_v44 }
 0x688   :  { %v650_v46 = vpop.f32.mrf.mxu1 }
 0x689   :  { %v654_v47 = vadd.f32 %v682_v45, %v650_v46 }
 0x68a   :  { %v908_v48 = vpop.f32.mrf.mxu1 }
 0x68b   :  { %925 = vtanh.f32 %v654_v47 }
 0x698   :  { %v926_v49 = vpop.eup %925 }
 0x699   :  { %684 = vst.msk [vmem:[%s1197_s2 + $0xe] sm:$0x3] %vm15_vm0, %v926_v49  ;;  %658 = vst.msk [vmem:[#allocation2] sm:$0x3] %vm15_vm0, %v926_v49 }

</bundles_post_ra>
